<compile_context>
chip_gen: v7x
topology: tpu7x:2x2x1
jax: 0.10.0
libtpu: 0.0.40
codegen_flags: <defaults>
</compile_context>

<pallas_src>
import jax
import jax.numpy as jnp
from jax import lax
from jax.experimental import pallas as pl
from jax.experimental.pallas import tpu as pltpu


# --------------------------------------------------------------------------
# Kernels
# --------------------------------------------------------------------------
def _edge_mlp_pool_single_kernel(x_ref, oh_ref, w1_ref, b1_ref, w2_ref, b2_ref,
                                 w3_ref, b3_ref, out_ref):
    """Whole (padded) edge block in one grid step: MLP -> ReLU -> pool -> proj."""
    # Layer 1 (node/id encoders already folded into w1): bf16 MXU, f32 accum.
    h = jnp.dot(x_ref[...], w1_ref[...],
                preferred_element_type=jnp.float32) + b1_ref[...]
    h = jnp.maximum(h, 0.0)
    # Layer 2.
    h = jnp.dot(h.astype(w2_ref.dtype), w2_ref[...],
                preferred_element_type=jnp.float32) + b2_ref[...]
    h = jnp.maximum(h, 0.0)
    # Segment-sum via one-hot: contract over the edge dim (dim 0 of both
    # operands) -- no transpose materialized, MXU fed directly.
    pooled = lax.dot_general(
        oh_ref[...], h.astype(oh_ref.dtype),
        dimension_numbers=(((0,), (0,)), ((), ())),
        preferred_element_type=jnp.float32)
    # Final readout linear (lin_proj) -- tiny, keep f32.
    out_ref[...] = (jnp.dot(pooled, w3_ref[...],
                            preferred_element_type=jnp.float32)
                    + b3_ref[...]).astype(out_ref.dtype)


def _edge_mlp_pool_tiled_kernel(x_ref, oh_ref, w1_ref, b1_ref, w2_ref, b2_ref,
                                w3_ref, b3_ref, out_ref, acc_ref):
    """Accumulating variant for large edge counts (grid over edge tiles)."""
    i = pl.program_id(0)

    @pl.when(i == 0)
    def _():
        acc_ref[...] = jnp.zeros_like(acc_ref)

    h = jnp.dot(x_ref[...], w1_ref[...],
                preferred_element_type=jnp.float32) + b1_ref[...]
    h = jnp.maximum(h, 0.0)
    h = jnp.dot(h.astype(w2_ref.dtype), w2_ref[...],
                preferred_element_type=jnp.float32) + b2_ref[...]
    h = jnp.maximum(h, 0.0)

    acc_ref[...] += lax.dot_general(
        oh_ref[...], h.astype(oh_ref.dtype),
        dimension_numbers=(((0,), (0,)), ((), ())),
        preferred_element_type=jnp.float32)

    @pl.when(i == pl.num_programs(0) - 1)
    def _():
        out_ref[...] = (jnp.dot(acc_ref[...], w3_ref[...],
                                preferred_element_type=jnp.float32)
                        + b3_ref[...]).astype(out_ref.dtype)


# --------------------------------------------------------------------------
# Wrapper
# --------------------------------------------------------------------------
def mlp_substructures_pallas(x_edge, seg_onehot, w1, b1, w2, b2, w3, b3,
                             *, tile_e=None):
    """tile_e=None -> single grid step (default, preferred for E up to ~8K)."""
    E, d_in = x_edge.shape
    G = seg_onehot.shape[1]
    d_h = w1.shape[1]
    d_out = w2.shape[1]
    out_f = w3.shape[1]

    if tile_e is None or tile_e >= E:
        # Single step: all inputs resident in VMEM, no accumulator machinery,
        # no per-step pipeline overhead.  VMEM use here is tiny (<< 1 MiB).
        return pl.pallas_call(
            _edge_mlp_pool_single_kernel,
            out_shape=jax.ShapeDtypeStruct((G, out_f), jnp.float32),
        )(x_edge, seg_onehot, w1, b1, w2, b2, w3, b3)

    assert E % tile_e == 0, "edge dim must be padded to a multiple of tile_e"
    n_tiles = E // tile_e
    # TODO(synk): for very large E on v7x, split the edge axis across the two
    # TensorCores (leading 'parallel' grid axis with per-core partial sums).
    return pl.pallas_call(
        _edge_mlp_pool_tiled_kernel,
        out_shape=jax.ShapeDtypeStruct((G, out_f), jnp.float32),
        grid=(n_tiles,),
        in_specs=[
            pl.BlockSpec((tile_e, d_in), lambda i: (i, 0)),   # raw edge features
            pl.BlockSpec((tile_e, G), lambda i: (i, 0)),      # segment one-hot
            pl.BlockSpec((d_in, d_h), lambda i: (0, 0)),      # W1 (encoders folded)
            pl.BlockSpec((1, d_h), lambda i: (0, 0)),         # b1
            pl.BlockSpec((d_h, d_out), lambda i: (0, 0)),     # W2
            pl.BlockSpec((1, d_out), lambda i: (0, 0)),       # b2
            pl.BlockSpec((d_out, out_f), lambda i: (0, 0)),   # W3 (lin_proj)
            pl.BlockSpec((1, out_f), lambda i: (0, 0)),       # b3
        ],
        out_specs=pl.BlockSpec((G, out_f), lambda i: (0, 0)),
        scratch_shapes=[pltpu.VMEM((G, d_out), jnp.float32)],
        compiler_params=pltpu.CompilerParams(dimension_semantics=("arbitrary",)),
    )(x_edge, seg_onehot, w1, b1, w2, b2, w3, b3)


# --------------------------------------------------------------------------
# Glue: fold encoders into W1, gather raw features, one-hot segments, pad
# --------------------------------------------------------------------------
def build_edge_inputs(node_x, identifiers, edge_index, batch, num_graphs,
                      w_node_enc, w_id_enc, w1, pad_to=128):
    d_node = w_node_enc.shape[1]
    # concat(x_enc[i], x_enc[j], id_enc) @ W1
    #   == concat(node_x[i], node_x[j], identifiers) @ W1_fold
    w1_fold = jnp.concatenate([
        w_node_enc @ w1[:d_node],
        w_node_enc @ w1[d_node:2 * d_node],
        w_id_enc @ w1[2 * d_node:],
    ], axis=0)
    x_edge = jnp.concatenate([node_x[edge_index[0]],
                              node_x[edge_index[1]],
                              identifiers], axis=1)
    seg = batch[edge_index[0]]
    # TODO(synk): for large num_graphs, replace the dense one-hot + pooling
    # matmul with a scalar-prefetch (sorted-by-graph) segment-sum design.
    seg_onehot = jax.nn.one_hot(seg, num_graphs, dtype=jnp.float32)

    E = x_edge.shape[0]
    E_pad = ((E + pad_to - 1) // pad_to) * pad_to
    x_edge_p = jnp.zeros((E_pad, x_edge.shape[1]), jnp.float32).at[:E].set(x_edge)
    oh_p = jnp.zeros((E_pad, num_graphs), jnp.float32).at[:E].set(seg_onehot)
    # bf16 for the MXU-facing operands; padded rows are zero in the one-hot,
    # so they contribute nothing to the pooled sums.
    return (x_edge_p.astype(jnp.bfloat16),
            oh_p.astype(jnp.bfloat16),
            w1_fold.astype(jnp.bfloat16))


def _glorot(key, shape):
    fan_in, fan_out = shape[0], shape[1]
    lim = jnp.sqrt(6.0 / (fan_in + fan_out))
    return jax.random.uniform(key, shape, jnp.float32, -lim, lim)


# --------------------------------------------------------------------------
if __name__ == "__main__":
    key = jax.random.PRNGKey(0)
    ks = jax.random.split(key, 12)

    # sizes
    N = 16              # nodes
    E = 200             # edges
    G = 2               # graphs in the batch
    in_features = 4     # raw node feature dim
    n_id_feats = 6      # raw per-edge substructure-identifier dim
    d_node = 8          # input_node_encoder output dim
    d_id = 8            # id_encoder output dim
    d_h = 32            # conv MLP hidden
    d_out = 32          # conv MLP output
    out_features = 3    # classes

    # synthetic graph data
    node_x = jax.random.normal(ks[0], (N, in_features), jnp.float32)
    identifiers = jax.random.normal(ks[1], (E, n_id_feats), jnp.float32)
    edge_index = jax.random.randint(ks[2], (2, E), 0, N)
    batch = jnp.concatenate([jnp.zeros(N // 2, jnp.int32),
                             jnp.ones(N - N // 2, jnp.int32)])

    # deterministic parameters
    w_node_enc = _glorot(ks[3], (in_features, d_node))     # input_node_encoder
    w_id_enc = _glorot(ks[4], (n_id_feats, d_id))          # id_encoder
    mlp_in = 2 * d_node + d_id                              # local id_scope, no edge feats
    w1 = _glorot(ks[5], (mlp_in, d_h))
    b1 = jax.random.normal(ks[6], (1, d_h), jnp.float32) * 0.1
    w2 = _glorot(ks[7], (d_h, d_out))
    b2 = jax.random.normal(ks[8], (1, d_out), jnp.float32) * 0.1
    w3 = _glorot(ks[9], (d_out, out_features))
    b3 = jax.random.normal(ks[10], (1, out_features), jnp.float32) * 0.1

    # glue: fold encoders, gather raw features, pad edges to 256
    x_edge, oh, w1_fold = build_edge_inputs(
        node_x, identifiers, edge_index, batch, G,
        w_node_enc, w_id_enc, w1, pad_to=128)
    w2_b = w2.astype(jnp.bfloat16)

    # optimized path: single grid step over all (padded) edges
    pred = mlp_substructures_pallas(x_edge, oh, w1_fold, b1, w2_b, b2, w3, b3)
    pred = jax.block_until_ready(pred)

    # also exercise the tiled / accumulating path used for large edge counts
    pred_tiled = mlp_substructures_pallas(x_edge, oh, w1_fold, b1, w2_b, b2,
                                          w3, b3, tile_e=128)
    pred_tiled = jax.block_until_ready(pred_tiled)

    # pure-JAX reference (module semantics: unfolded encoders, f32)
    x_enc = node_x @ w_node_enc
    id_enc = identifiers @ w_id_enc
    x_in = jnp.concatenate([x_enc[edge_index[0]], x_enc[edge_index[1]], id_enc],
                           axis=1)
    h = jnp.maximum(x_in @ w1 + b1, 0.0)
    h = jnp.maximum(h @ w2 + b2, 0.0)
    pooled = jax.ops.segment_sum(h, batch[edge_index[0]], num_segments=G)
    ref = pooled @ w3 + b3

    assert pred.shape == (G, out_features)
    scale = float(jnp.max(jnp.abs(ref))) + 1e-6
    assert float(jnp.max(jnp.abs(pred - ref))) <= 0.05 * scale + 0.05
    assert float(jnp.max(jnp.abs(pred_tiled - ref))) <= 0.05 * scale + 0.05

    # TODO(synk): torch.nn.Dropout / BatchNorm1d / degree & edge encoders are
    # disabled by the chosen config (eval mode, bn=False) and intentionally
    # not implemented in the kernel.
    print("KERNEL_OK")
</pallas_src>

<mosaic_0001>
module attributes {stable_mosaic.version = 11 : i64} {
  func.func @_edge_mlp_pool_single_kernel(%arg0: memref<256x14xbf16, #tpu.memory_space<vmem>>, %arg1: memref<256x2xbf16, #tpu.memory_space<vmem>>, %arg2: memref<14x32xbf16, #tpu.memory_space<vmem>>, %arg3: memref<1x32xf32, #tpu.memory_space<vmem>>, %arg4: memref<32x32xbf16, #tpu.memory_space<vmem>>, %arg5: memref<1x32xf32, #tpu.memory_space<vmem>>, %arg6: memref<32x3xf32, #tpu.memory_space<vmem>>, %arg7: memref<1x3xf32, #tpu.memory_space<vmem>>, %arg8: memref<2x3xf32, #tpu.memory_space<vmem>>) attributes {dimension_semantics = [], scalar_prefetch = 0 : i64, scratch_operands = 0 : i64, tpu.core_type = #tpu.core_type<tc>} {
    %c0 = arith.constant 0 : index
    %c0_0 = arith.constant 0 : index
    %0 = vector.load %arg0[%c0, %c0_0] : memref<256x14xbf16, #tpu.memory_space<vmem>>, vector<256x14xbf16>
    %c0_1 = arith.constant 0 : index
    %c0_2 = arith.constant 0 : index
    %1 = vector.load %arg2[%c0_1, %c0_2] : memref<14x32xbf16, #tpu.memory_space<vmem>>, vector<14x32xbf16>
    %cst = arith.constant dense<0.000000e+00> : vector<256x32xf32>
    %2 = tpu.matmul %0, %1, %cst {dimension_numbers = #tpu.dot_dimension_numbers<[1], [0], [0], [1], [0, 0, 1, 1], [], []>} : vector<256x14xbf16>, vector<14x32xbf16>, vector<256x32xf32> -> vector<256x32xf32>
    %c0_3 = arith.constant 0 : index
    %c0_4 = arith.constant 0 : index
    %3 = vector.load %arg3[%c0_3, %c0_4] : memref<1x32xf32, #tpu.memory_space<vmem>>, vector<1x32xf32>
    %4 = vector.broadcast %3 : vector<1x32xf32> to vector<256x32xf32>
    %5 = arith.addf %2, %4 : vector<256x32xf32>
    %cst_5 = arith.constant 0.000000e+00 : f32
    %6 = vector.broadcast %cst_5 : f32 to vector<256x32xf32>
    %7 = arith.maximumf %5, %6 : vector<256x32xf32>
    %8 = arith.truncf %7 : vector<256x32xf32> to vector<256x32xbf16>
    %c0_6 = arith.constant 0 : index
    %c0_7 = arith.constant 0 : index
    %9 = vector.load %arg4[%c0_6, %c0_7] : memref<32x32xbf16, #tpu.memory_space<vmem>>, vector<32x32xbf16>
    %cst_8 = arith.constant dense<0.000000e+00> : vector<256x32xf32>
    %10 = tpu.matmul %8, %9, %cst_8 {dimension_numbers = #tpu.dot_dimension_numbers<[1], [0], [0], [1], [0, 0, 1, 1], [], []>} : vector<256x32xbf16>, vector<32x32xbf16>, vector<256x32xf32> -> vector<256x32xf32>
    %c0_9 = arith.constant 0 : index
    %c0_10 = arith.constant 0 : index
    %11 = vector.load %arg5[%c0_9, %c0_10] : memref<1x32xf32, #tpu.memory_space<vmem>>, vector<1x32xf32>
    %12 = vector.broadcast %11 : vector<1x32xf32> to vector<256x32xf32>
    %13 = arith.addf %10, %12 : vector<256x32xf32>
    %cst_11 = arith.constant 0.000000e+00 : f32
    %14 = vector.broadcast %cst_11 : f32 to vector<256x32xf32>
    %15 = arith.maximumf %13, %14 : vector<256x32xf32>
    %c0_12 = arith.constant 0 : index
    %c0_13 = arith.constant 0 : index
    %16 = vector.load %arg1[%c0_12, %c0_13] : memref<256x2xbf16, #tpu.memory_space<vmem>>, vector<256x2xbf16>
    %17 = arith.truncf %15 : vector<256x32xf32> to vector<256x32xbf16>
    %cst_14 = arith.constant dense<0.000000e+00> : vector<2x32xf32>
    %18 = tpu.matmul %16, %17, %cst_14 {dimension_numbers = #tpu.dot_dimension_numbers<[0], [0], [1], [1], [0, 1, 1, 1], [], []>} : vector<256x2xbf16>, vector<256x32xbf16>, vector<2x32xf32> -> vector<2x32xf32>
    %c0_15 = arith.constant 0 : index
    %c0_16 = arith.constant 0 : index
    %19 = vector.load %arg6[%c0_15, %c0_16] : memref<32x3xf32, #tpu.memory_space<vmem>>, vector<32x3xf32>
    %cst_17 = arith.constant dense<0.000000e+00> : vector<2x3xf32>
    %20 = tpu.matmul %18, %19, %cst_17 {dimension_numbers = #tpu.dot_dimension_numbers<[1], [0], [0], [1], [0, 0, 1, 1], [], []>} : vector<2x32xf32>, vector<32x3xf32>, vector<2x3xf32> -> vector<2x3xf32>
    %c0_18 = arith.constant 0 : index
    %c0_19 = arith.constant 0 : index
    %21 = vector.load %arg7[%c0_18, %c0_19] : memref<1x3xf32, #tpu.memory_space<vmem>>, vector<1x3xf32>
    %22 = vector.broadcast %21 : vector<1x3xf32> to vector<2x3xf32>
    %23 = arith.addf %20, %22 : vector<2x3xf32>
    %c0_20 = arith.constant 0 : index
    %c0_21 = arith.constant 0 : index
    %24 = vector.load %arg8[%c0_20, %c0_21] : memref<2x3xf32, #tpu.memory_space<vmem>>, vector<2x3xf32>
    tpu.vector_store %arg8[%c0_20, %c0_21], %23 {strides = array<i32>} : memref<2x3xf32, #tpu.memory_space<vmem>>, vector<2x3xf32>,
    return
  }
}

</mosaic_0001>

<bundles_post_ra>
// kernel: tpu_custom_call.1
= control target key start
LH: loop header
LB: loop body
LE: loop exit
PB: predicated region body
PF: predicated region fallthrough
CT: control target
= control target key end

     0   :  { %vm206_vm0 = vcmask 1046528   ;;  %vm157_vm1 = vcmask 113664   ;;  %s1596_s0 = inlined_call_operand.vmem [shape: bf16[256,14], index: 0, kind: input, shape index: {}]   ;;  %s1597_s1 = inlined_call_operand.vmem [shape: bf16[256,2], index: 1, kind: input, shape index: {}]   ;;  %s1598_s2 = inlined_call_operand.vmem [shape: bf16[14,32], index: 2, kind: input, shape index: {}]   ;;  %s1599_s3 = inlined_call_operand.vmem [shape: f32[1,32], index: 3, kind: input, shape index: {}]   ;;  %s1600_s4 = inlined_call_operand.vmem [shape: bf16[32,32], index: 4, kind: input, shape index: {}]   ;;  %s1601_s5 = inlined_call_operand.vmem [shape: f32[1,32], index: 5, kind: input, shape index: {}]   ;;  %s1602_s6 = inlined_call_operand.vmem [shape: f32[32,3], index: 6, kind: input, shape index: {}]   ;;  %s1603_s7 = inlined_call_operand.vmem [shape: f32[1,3], index: 7, kind: input, shape index: {}]   ;;  %s1604_s8 = inlined_call_operand.hbm [shape: f32[2,3], index: 8, kind: output, shape index: {}]  }
   0x1   :  { %v1225_v0 = vld [vmem:[%s1598_s2] sm:$0x7f]   ;;  %v1227_v3 = vld [vmem:[%s1596_s0 + $0x8] sm:$0xff]   ;;  %v1228_v4 = vld [vmem:[%s1596_s0 + $0x10] sm:$0xff]  }
   0x2   :  { %v1226_v1 = vld [vmem:[%s1596_s0] sm:$0xff]   ;;  %1220 = vmatprep.subr.msk.bf16.mxu0 %vm206_vm0, %v1225_v0  ;;  %v208_v2 = vsel %vm206_vm0, %v1225_v0, 0  ;;  %v1229_v5 = vld [vmem:[%s1596_s0 + $0x18] sm:$0xff]   ;;  %v1231_v7 = vld [vmem:[%s1596_s0 + $0x28] sm:$0xff]  }
   0x3   :  { %1134 = vmatpush3.bf16.msra.mxu0 %v208_v2  ;;  %1135 = vmatprep.mubr.msk.bf16.mxu0 %vm157_vm1, %v1226_v1  ;;  %v1230_v6 = vld [vmem:[%s1596_s0 + $0x20] sm:$0xff]   ;;  %v1232_v8 = vld [vmem:[%s1596_s0 + $0x30] sm:$0xff]   ;;  %v1233_v9 = vld [vmem:[%s1596_s0 + $0x38] sm:$0xff]  }
   0x4   :  { %v1234_v10 = vld [vmem:[%s1596_s0 + $0x40] sm:$0xff]  }
   0x6   :  { %1136 = vmatmul.mubr.msk.bf16.vlgmr.msra.gmra.mrb[0].mxu0 %vm157_vm1, %v1227_v3 }
   0x7   :  { %1139 = vmatprep.mubr.msk.bf16.mxu0 %vm157_vm1, %v1228_v4 }
   0xe   :  { %1140 = vmatmul.mubr.msk.bf16.gmra.mrb[4].mxu0 %vm157_vm1, %v1229_v5 }
   0xf   :  { %1143 = vmatprep.mubr.msk.bf16.mxu0 %vm157_vm1, %v1230_v6 }
  0x16   :  { %1144 = vmatmul.mubr.msk.bf16.gmra.mrb[8].mxu0 %vm157_vm1, %v1231_v7 }
  0x17   :  { %1147 = vmatprep.mubr.msk.bf16.mxu0 %vm157_vm1, %v1232_v8 }
  0x18   :  { %13 = vsyncpa [#allocation3], 0  ;;  %v1235_v11 = vld [vmem:[%s1596_s0 + $0x48] sm:$0xff]   ;;  %v1236_v12 = vld [vmem:[%s1596_s0 + $0x50] sm:$0xff]   ;;  %vm442_vm2 = vcmask 261120   ;;  %vm1285_vm3 = vmmov 0  }
  0x19   :  { %v1237_v13 = vld [vmem:[%s1596_s0 + $0x58] sm:$0xff]   ;;  %v1238_v14 = vld [vmem:[%s1596_s0 + $0x60] sm:$0xff]   ;;  %v1239_v15 = vld [vmem:[%s1596_s0 + $0x68] sm:$0xff]   ;;  %s1287_s11 = smov [#allocation2]   ;;  %vm984_vm4 = vcmask 17408  }
  0x1a   :  { %v1240_v16 = vld [vmem:[%s1596_s0 + $0x70] sm:$0xff]   ;;  %v1241_v17 = vld [vmem:[%s1596_s0 + $0x78] sm:$0xff]   ;;  %v1242_v18 = vld [vmem:[%s1600_s4] sm:$0xff]   ;;  %s992_s12 = sshll.u32 %s1287_s11, 4  ;;  %s993_s12 = int_to_ptr.vmem [resolvable:$true] %s992_s12 }
  0x1b   :  { %1167 = vmatprep.subr.bf16.mxu1 %v1242_v18  ;;  %v1243_v19 = vld [vmem:[%s1600_s4 + $0x8] sm:$0xff]   ;;  %v1244_v20 = vld [vmem:[%s1597_s1 + $0x40] sm:$0xff]   ;;  %s1260_s2 = scalar_lea.vmem %s993_s12, 32  ;;  %p1265_p1 = scmp.lt.s32.totalorder %s993_s12, %s993_s12 }
  0x1c   :  { %1168 = vmatpush3.bf16.msra.mxu1 %v1242_v18  ;;  %844 = vxpose.xlu0.c.b16.start [1/8] (narrow) %v1244_v20, 16  ;;  %v1412_v21 = vld [vmem:[%s1599_s3] ss:$0 sm:$0xff]  ;;  %p1261_p0 = scmp.ne.s32.totalorder %s993_s12, %s1260_s2  ;;  %p1266_p2 = scmp.lt.s32.totalorder %s1260_s2, %s1260_s2 }
  0x1d   :  { %1169 = vmatprep.subr.bf16.mxu1 %v1243_v19 }
  0x1e   :  { %1148 = vmatmul.mubr.msk.bf16.gmra.mrb[12].mxu0 %vm157_vm1, %v1233_v9  ;;  %p1267_p3 = por %p1266_p2, %p1265_p1 }
  0x1f   :  { %1151 = vmatprep.mubr.msk.bf16.mxu0 %vm157_vm1, %v1234_v10 }
  0x20   :  { %1170 = vmatpush3.bf16.msra.mxu1 %v1243_v19  ;;  %p1268_p4 = pnand %p1267_p3, %p1261_p0 }
  0x26   :  { %1152 = vmatmul.mubr.msk.bf16.gmra.mrb[16].mxu0 %vm157_vm1, %v1235_v11 }
  0x27   :  { %1155 = vmatprep.mubr.msk.bf16.mxu0 %vm157_vm1, %v1236_v12 }
  0x2e   :  { %1156 = vmatmul.mubr.msk.bf16.gmra.mrb[20].mxu0 %vm157_vm1, %v1237_v13 }
  0x2f   :  { %1159 = vmatprep.mubr.msk.bf16.mxu0 %vm157_vm1, %v1238_v14 }
  0x36   :  { %1160 = vmatmul.mubr.msk.bf16.gmra.mrb[24].mxu0 %vm157_vm1, %v1239_v15 }
  0x37   :  { %1163 = vmatprep.mubr.msk.bf16.mxu0 %vm157_vm1, %v1240_v16 }
  0x3e   :  { %1164 = vmatmul.mubr.msk.bf16.gmra.mrb[28].mxu0 %vm157_vm1, %v1241_v17 }
  0xd9   :  { %v1137_v22 = vpop.f32.mrb[0].mxu0 }
  0xda   :  { %v253_v23 = vadd.f32 %v1137_v22, %v1412_v21  ;;  %v244_v24 = vpop.f32.mrb[1].mxu0 }
  0xdb   :  { %v245_v25 = vadd.f32 %v1412_v21, %v244_v24  ;;  %v1138_v26 = vpop.f32.mrb[2].mxu0 }
  0xdc   :  { %v256_v27 = vadd.f32 %v1138_v26, %v1412_v21  ;;  %v247_v28 = vpop.f32.mrb[3].mxu0  ;;  %v373_v30 = vmax.f32 %v253_v23, 0.0 }
  0xdd   :  { %v248_v29 = vadd.f32 %v1412_v21, %v247_v28  ;;  %v371_v32 = vmax.f32 %v245_v25, 0.0 }
  0xde   :  { %v374_v31 = vmax.f32 %v256_v27, 0.0 }
  0xdf   :  { %v372_v33 = vmax.f32 %v248_v29, 0.0 }
  0xe0   :  { %v404_v34 = vpack.c.bf16 %v374_v31, %v373_v30 }
  0xe1   :  { %v1141_v35 = vpop.f32.mrb[4].mxu0  ;;  %v403_v36 = vpack.c.bf16 %v372_v33, %v371_v32 }
  0xe2   :  { %v269_v37 = vadd.f32 %v1141_v35, %v1412_v21  ;;  %v260_v38 = vpop.f32.mrb[5].mxu0 }
  0xe3   :  { %v261_v39 = vadd.f32 %v1412_v21, %v260_v38  ;;  %v1142_v40 = vpop.f32.mrb[6].mxu0  ;;  %1171 = vmatprep.mubr.msk.bf16.mxu1 %vm442_vm2, %v403_v36 }
  0xe4   :  { %v272_v41 = vadd.f32 %v1142_v40, %v1412_v21  ;;  %v263_v42 = vpop.f32.mrb[7].mxu0  ;;  %1172 = vmatmul.mubr.msk.bf16.vlgmr.msra.gmra.mrb[0].mxu1 %vm442_vm2, %v404_v34  ;;  %v377_v44 = vmax.f32 %v269_v37, 0.0 }
  0xe5   :  { %v264_v43 = vadd.f32 %v1412_v21, %v263_v42  ;;  %v375_v46 = vmax.f32 %v261_v39, 0.0 }
  0xe6   :  { %v378_v45 = vmax.f32 %v272_v41, 0.0 }
  0xe7   :  { %v376_v47 = vmax.f32 %v264_v43, 0.0 }
  0xe8   :  { %v406_v48 = vpack.c.bf16 %v378_v45, %v377_v44 }
  0xe9   :  { %v405_v49 = vpack.c.bf16 %v376_v47, %v375_v46  ;;  %v1145_v50 = vpop.f32.mrb[8].mxu0 }
  0xea   :  { %v285_v51 = vadd.f32 %v1145_v50, %v1412_v21  ;;  %v276_v52 = vpop.f32.mrb[9].mxu0 }
  0xeb   :  { %v277_v53 = vadd.f32 %v1412_v21, %v276_v52  ;;  %v1146_v54 = vpop.f32.mrb[10].mxu0  ;;  %1175 = vmatprep.mubr.msk.bf16.mxu1 %vm442_vm2, %v405_v49 }
  0xec   :  { %v288_v55 = vadd.f32 %v1146_v54, %v1412_v21  ;;  %v279_v56 = vpop.f32.mrb[11].mxu0  ;;  %1176 = vmatmul.mubr.msk.bf16.gmra.mrb[4].mxu1 %vm442_vm2, %v406_v48  ;;  %v381_v58 = vmax.f32 %v285_v51, 0.0 }
  0xed   :  { %v280_v57 = vadd.f32 %v1412_v21, %v279_v56  ;;  %v379_v60 = vmax.f32 %v277_v53, 0.0 }
  0xee   :  { %v382_v59 = vmax.f32 %v288_v55, 0.0 }
  0xef   :  { %v380_v61 = vmax.f32 %v280_v57, 0.0 }
  0xf0   :  { %v408_v62 = vpack.c.bf16 %v382_v59, %v381_v58 }
  0xf1   :  { %v407_v63 = vpack.c.bf16 %v380_v61, %v379_v60  ;;  %v1149_v0 = vpop.f32.mrb[12].mxu0 }
  0xf2   :  { %v301_v1 = vadd.f32 %v1149_v0, %v1412_v21  ;;  %v292_v2 = vpop.f32.mrb[13].mxu0 }
  0xf3   :  { %v293_v3 = vadd.f32 %v1412_v21, %v292_v2  ;;  %v1150_v4 = vpop.f32.mrb[14].mxu0  ;;  %1179 = vmatprep.mubr.msk.bf16.mxu1 %vm442_vm2, %v407_v63 }
  0xf4   :  { %v304_v5 = vadd.f32 %v1150_v4, %v1412_v21  ;;  %v295_v6 = vpop.f32.mrb[15].mxu0  ;;  %1180 = vmatmul.mubr.msk.bf16.gmra.mrb[8].mxu1 %vm442_vm2, %v408_v62  ;;  %v385_v8 = vmax.f32 %v301_v1, 0.0 }
  0xf5   :  { %v296_v7 = vadd.f32 %v1412_v21, %v295_v6  ;;  %v383_v10 = vmax.f32 %v293_v3, 0.0  ;;  %v1245_v6 = vld [vmem:[%s1597_s1] sm:$0xff]  }
  0xf6   :  { %v386_v9 = vmax.f32 %v304_v5, 0.0  ;;  %828 = vxpose.xlu1.c.b16.start [1/8] (narrow) %v1245_v6, 16 }
  0xf7   :  { %v384_v11 = vmax.f32 %v296_v7, 0.0 }
  0xf8   :  { %v410_v12 = vpack.c.bf16 %v386_v9, %v385_v8  ;;  %v1246_v8 = vld [vmem:[%s1597_s1 + $0x48] sm:$0xff]   ;;  %v1248_v9 = vld [vmem:[%s1597_s1 + $0x50] sm:$0xff]  }
  0xf9   :  { %v409_v13 = vpack.c.bf16 %v384_v11, %v383_v10  ;;  %v1153_v14 = vpop.f32.mrb[16].mxu0  ;;  %845 = vxpose.xlu0.c.b16.cont [2/8] (narrow) %v1246_v8, 16  ;;  %v1249_v10 = vld [vmem:[%s1597_s1 + $0x10] sm:$0xff]   ;;  %v1250_v11 = vld [vmem:[%s1597_s1 + $0x58] sm:$0xff]  }
  0xfa   :  { %v317_v15 = vadd.f32 %v1153_v14, %v1412_v21  ;;  %v308_v16 = vpop.f32.mrb[17].mxu0  ;;  %v1253_v14 = vld [vmem:[%s1597_s1 + $0x20] sm:$0xff]  }
  0xfb   :  { %v309_v17 = vadd.f32 %v1412_v21, %v308_v16  ;;  %v1154_v18 = vpop.f32.mrb[18].mxu0  ;;  %1183 = vmatprep.mubr.msk.bf16.mxu1 %vm442_vm2, %v409_v13  ;;  %v1252_v13 = vld [vmem:[%s1597_s1 + $0x60] sm:$0xff]   ;;  %v1255_v16 = vld [vmem:[%s1597_s1 + $0x28] sm:$0xff]  }
  0xfc   :  { %v320_v19 = vadd.f32 %v1154_v18, %v1412_v21  ;;  %v311_v20 = vpop.f32.mrb[19].mxu0  ;;  %1184 = vmatmul.mubr.msk.bf16.gmra.mrb[12].mxu1 %vm442_vm2, %v410_v12  ;;  %v389_v23 = vmax.f32 %v317_v15, 0.0  ;;  %v1251_v12 = vld [vmem:[%s1597_s1 + $0x18] sm:$0xff]   ;;  %v1254_v15 = vld [vmem:[%s1597_s1 + $0x68] sm:$0xff]   ;;  %v1257_v18 = vld [vmem:[%s1597_s1 + $0x30] sm:$0xff]  }
  0xfd   :  { %v312_v22 = vadd.f32 %v1412_v21, %v311_v20  ;;  %v387_v25 = vmax.f32 %v309_v17, 0.0  ;;  %846 = vxpose.xlu0.c.b16.cont [3/8] (narrow) %v1248_v9, 16  ;;  %v1256_v17 = vld [vmem:[%s1597_s1 + $0x70] sm:$0xff]   ;;  %v1259_v20 = vld [vmem:[%s1597_s1 + $0x38] sm:$0xff]  }
  0xfe   :  { %v390_v24 = vmax.f32 %v320_v19, 0.0  ;;  %v1258_v19 = vld [vmem:[%s1597_s1 + $0x78] sm:$0xff]  }
  0xff   :  { %v388_v26 = vmax.f32 %v312_v22, 0.0 }
 0x100   :  { %v412_v27 = vpack.c.bf16 %v390_v24, %v389_v23  ;;  %v900_v23 = vld [vmem:[%s1602_s6] sm:$0xff]  ;;  %v901_v24 = vld [vmem:[%s1602_s6 + $0x8] sm:$0xff] }
 0x101   :  { %v411_v28 = vpack.c.bf16 %v388_v26, %v387_v25  ;;  %v1157_v29 = vpop.f32.mrb[20].mxu0  ;;  %847 = vxpose.xlu0.c.b16.cont [4/8] (narrow) %v1250_v11, 16  ;;  %v902_v25 = vld [vmem:[%s1602_s6 + $0x10] sm:$0xff]  ;;  %v1284_v26 = vmov 0.0|0.0  }
 0x102   :  { %v333_v30 = vadd.f32 %v1157_v29, %v1412_v21  ;;  %v324_v31 = vpop.f32.mrb[21].mxu0  ;;  %1214 = vmatprep.subr.bf16.mxu1 %v1284_v26 }
 0x103   :  { %v325_v32 = vadd.f32 %v1412_v21, %v324_v31  ;;  %v1158_v33 = vpop.f32.mrb[22].mxu0  ;;  %1187 = vmatprep.mubr.msk.bf16.mxu1 %vm442_vm2, %v411_v28  ;;  %v903_v28 = vld [vmem:[%s1602_s6 + $0x18] sm:$0xff] }
 0x104   :  { %v336_v34 = vadd.f32 %v1158_v33, %v1412_v21  ;;  %v327_v35 = vpop.f32.mrb[23].mxu0  ;;  %1188 = vmatmul.mubr.msk.bf16.gmra.mrb[16].mxu1 %vm442_vm2, %v412_v27  ;;  %v393_v37 = vmax.f32 %v333_v30, 0.0  ;;  %v1215_v27 = vpack.c.bf16 %v901_v24, %v900_v23  ;;  %v1218_v29 = vpack.c.bf16 %v903_v28, %v902_v25  ;;  %v1522_v30 = vld [vmem:[%s1601_s5] ss:$0 sm:$0xff] }
 0x105   :  { %v328_v36 = vadd.f32 %v1412_v21, %v327_v35  ;;  %v391_v39 = vmax.f32 %v325_v32, 0.0  ;;  %848 = vxpose.xlu0.c.b16.cont [5/8] (narrow) %v1252_v13, 16 }
 0x106   :  { %v394_v38 = vmax.f32 %v336_v34, 0.0  ;;  %1216 = vmatpush3.bf16.msra.mxu1 %v1215_v27 }
 0x107   :  { %v392_v40 = vmax.f32 %v328_v36, 0.0  ;;  %1217 = vmatprep.subr.bf16.mxu1 %v1284_v26 }
 0x108   :  { %v414_v41 = vpack.c.bf16 %v394_v38, %v393_v37 }
 0x109   :  { %v413_v42 = vpack.c.bf16 %v392_v40, %v391_v39  ;;  %v1161_v43 = vpop.f32.mrb[24].mxu0  ;;  %849 = vxpose.xlu0.c.b16.cont [6/8] (narrow) %v1254_v15, 16 }
 0x10a   :  { %v349_v44 = vadd.f32 %v1161_v43, %v1412_v21  ;;  %v340_v45 = vpop.f32.mrb[25].mxu0  ;;  %1219 = vmatpush3.bf16.msra.mxu1 %v1218_v29 }
 0x10b   :  { %v341_v46 = vadd.f32 %v1412_v21, %v340_v45  ;;  %v1162_v47 = vpop.f32.mrb[26].mxu0  ;;  %1191 = vmatprep.mubr.msk.bf16.mxu1 %vm442_vm2, %v413_v42 }
 0x10c   :  { %v352_v48 = vadd.f32 %v1162_v47, %v1412_v21  ;;  %v343_v49 = vpop.f32.mrb[27].mxu0  ;;  %1192 = vmatmul.mubr.msk.bf16.gmra.mrb[20].mxu1 %vm442_vm2, %v414_v41  ;;  %v397_v51 = vmax.f32 %v349_v44, 0.0 }
 0x10d   :  { %v344_v50 = vadd.f32 %v1412_v21, %v343_v49  ;;  %v395_v53 = vmax.f32 %v341_v46, 0.0  ;;  %850 = vxpose.xlu0.c.b16.cont [7/8] (narrow) %v1256_v17, 16 }
 0x10e   :  { %v398_v52 = vmax.f32 %v352_v48, 0.0 }
 0x10f   :  { %v396_v54 = vmax.f32 %v344_v50, 0.0 }
 0x110   :  { %v416_v55 = vpack.c.bf16 %v398_v52, %v397_v51 }
 0x111   :  { %v415_v56 = vpack.c.bf16 %v396_v54, %v395_v53  ;;  %v1165_v57 = vpop.f32.mrb[28].mxu0  ;;  %851 = vxpose.xlu0.c.b16.end [8/8] (narrow) %v1258_v19, 16 }
 0x112   :  { %v365_v58 = vadd.f32 %v1165_v57, %v1412_v21  ;;  %v356_v59 = vpop.f32.mrb[29].mxu0 }
 0x113   :  { %v357_v60 = vadd.f32 %v1412_v21, %v356_v59  ;;  %v1166_v61 = vpop.f32.mrb[30].mxu0  ;;  %1195 = vmatprep.mubr.msk.bf16.mxu1 %vm442_vm2, %v415_v56 }
 0x114   :  { %v368_v62 = vadd.f32 %v1166_v61, %v1412_v21  ;;  %v359_v63 = vpop.f32.mrb[31].mxu0  ;;  %1196 = vmatmul.mubr.msk.bf16.gmra.mrb[24].mxu1 %vm442_vm2, %v416_v55  ;;  %v401_v1 = vmax.f32 %v365_v58, 0.0 }
 0x115   :  { %v360_v0 = vadd.f32 %v1412_v21, %v359_v63  ;;  %v399_v3 = vmax.f32 %v357_v60, 0.0  ;;  %v1247_v21 = vld [vmem:[%s1597_s1 + $0x8] sm:$0xff]  }
 0x116   :  { %v402_v2 = vmax.f32 %v368_v62, 0.0  ;;  %829 = vxpose.xlu1.c.b16.cont [2/8] (narrow) %v1247_v21, 16 }
 0x117   :  { %v400_v4 = vmax.f32 %v360_v0, 0.0 }
 0x118   :  { %v418_v5 = vpack.c.bf16 %v402_v2, %v401_v1 }
 0x119   :  { %v417_v7 = vpack.c.bf16 %v400_v4, %v399_v3 }
 0x11a   :  { %830 = vxpose.xlu1.c.b16.cont [3/8] (narrow) %v1249_v10, 16 }
 0x11b   :  { %1199 = vmatprep.mubr.msk.bf16.mxu1 %vm442_vm2, %v417_v7 }
 0x11c   :  { %1200 = vmatmul.mubr.msk.bf16.gmra.mrb[28].mxu1 %vm442_vm2, %v418_v5 }
 0x11e   :  { %831 = vxpose.xlu1.c.b16.cont [4/8] (narrow) %v1251_v12, 16 }
 0x122   :  { %832 = vxpose.xlu1.c.b16.cont [5/8] (narrow) %v1253_v14, 16 }
 0x126   :  { %833 = vxpose.xlu1.c.b16.cont [6/8] (narrow) %v1255_v16, 16 }
 0x12a   :  { %834 = vxpose.xlu1.c.b16.cont [7/8] (narrow) %v1257_v18, 16 }
 0x12e   :  { %835 = vxpose.xlu1.c.b16.end [8/8] (narrow) %v1259_v20, 16 }
 0x15b   :  { %v852_v22 = vpop.trf.xlu0 }
 0x15c   :  { %892 = vmatprep.mubr.bf16.mxu0 %v852_v22 }
 0x1b7   :  { %v1173_v31 = vpop.f32.mrb[0].mxu1 }
 0x1b8   :  { %v534_v32 = vadd.f32 %v1173_v31, %v1522_v30  ;;  %v525_v33 = vpop.f32.mrb[1].mxu1 }
 0x1b9   :  { %v526_v34 = vadd.f32 %v1522_v30, %v525_v33  ;;  %v1174_v35 = vpop.f32.mrb[2].mxu1 }
 0x1ba   :  { %v537_v36 = vadd.f32 %v1174_v35, %v1522_v30  ;;  %v528_v37 = vpop.f32.mrb[3].mxu1  ;;  %v654_v39 = vmax.f32 %v534_v32, 0.0 }
 0x1bb   :  { %v529_v38 = vadd.f32 %v1522_v30, %v528_v37  ;;  %v652_v41 = vmax.f32 %v526_v34, 0.0 }
 0x1bc   :  { %v655_v40 = vmax.f32 %v537_v36, 0.0 }
 0x1bd   :  { %v653_v42 = vmax.f32 %v529_v38, 0.0 }
 0x1be   :  { %v1528_v43 = vpack.c.bf16 %v655_v40, %v654_v39 }
 0x1bf   :  { %v1530_v44 = vpack.c.bf16 %v653_v42, %v652_v41  ;;  %v1177_v45 = vpop.f32.mrb[4].mxu1 }
 0x1c0   :  { %v550_v46 = vadd.f32 %v1177_v45, %v1522_v30  ;;  %v541_v47 = vpop.f32.mrb[5].mxu1 }
 0x1c1   :  { %v542_v48 = vadd.f32 %v1522_v30, %v541_v47  ;;  %v1178_v49 = vpop.f32.mrb[6].mxu1 }
 0x1c2   :  { %v553_v50 = vadd.f32 %v1178_v49, %v1522_v30  ;;  %v544_v51 = vpop.f32.mrb[7].mxu1  ;;  %v658_v53 = vmax.f32 %v550_v46, 0.0 }
 0x1c3   :  { %v545_v52 = vadd.f32 %v1522_v30, %v544_v51  ;;  %v656_v55 = vmax.f32 %v542_v48, 0.0 }
 0x1c4   :  { %v659_v54 = vmax.f32 %v553_v50, 0.0 }
 0x1c5   :  { %v657_v56 = vmax.f32 %v545_v52, 0.0 }
 0x1c6   :  { %v1536_v57 = vpack.c.bf16 %v659_v54, %v658_v53 }
 0x1c7   :  { %v1538_v58 = vpack.c.bf16 %v657_v56, %v656_v55  ;;  %v1181_v59 = vpop.f32.mrb[8].mxu1 }
 0x1c8   :  { %v566_v60 = vadd.f32 %v1181_v59, %v1522_v30  ;;  %v557_v61 = vpop.f32.mrb[9].mxu1 }
 0x1c9   :  { %v558_v62 = vadd.f32 %v1522_v30, %v557_v61  ;;  %v1182_v63 = vpop.f32.mrb[10].mxu1 }
 0x1ca   :  { %v569_v0 = vadd.f32 %v1182_v63, %v1522_v30  ;;  %v560_v1 = vpop.f32.mrb[11].mxu1  ;;  %v662_v3 = vmax.f32 %v566_v60, 0.0 }
 0x1cb   :  { %v561_v2 = vadd.f32 %v1522_v30, %v560_v1  ;;  %v660_v5 = vmax.f32 %v558_v62, 0.0 }
 0x1cc   :  { %v663_v4 = vmax.f32 %v569_v0, 0.0 }
 0x1cd   :  { %v661_v6 = vmax.f32 %v561_v2, 0.0 }
 0x1ce   :  { %v1544_v7 = vpack.c.bf16 %v663_v4, %v662_v3 }
 0x1cf   :  { %v1546_v8 = vpack.c.bf16 %v661_v6, %v660_v5  ;;  %v1185_v21 = vpop.f32.mrb[12].mxu1 }
 0x1d0   :  { %v582_v9 = vadd.f32 %v1185_v21, %v1522_v30  ;;  %v573_v10 = vpop.f32.mrb[13].mxu1 }
 0x1d1   :  { %v574_v11 = vadd.f32 %v1522_v30, %v573_v10  ;;  %v1186_v12 = vpop.f32.mrb[14].mxu1 }
 0x1d2   :  { %v585_v13 = vadd.f32 %v1186_v12, %v1522_v30  ;;  %v576_v14 = vpop.f32.mrb[15].mxu1  ;;  %v666_v16 = vmax.f32 %v582_v9, 0.0 }
 0x1d3   :  { %v577_v15 = vadd.f32 %v1522_v30, %v576_v14  ;;  %v664_v18 = vmax.f32 %v574_v11, 0.0 }
 0x1d4   :  { %v667_v17 = vmax.f32 %v585_v13, 0.0 }
 0x1d5   :  { %v665_v19 = vmax.f32 %v577_v15, 0.0 }
 0x1d6   :  { %v1552_v20 = vpack.c.bf16 %v667_v17, %v666_v16  ;;  %v836_v17 = vpop.trf.xlu1 }
 0x1d7   :  { %v1554_v22 = vpack.c.bf16 %v665_v19, %v664_v18  ;;  %v1189_v23 = vpop.f32.mrb[16].mxu1 }
 0x1d8   :  { %v598_v24 = vadd.f32 %v1189_v23, %v1522_v30  ;;  %v589_v25 = vpop.f32.mrb[17].mxu1 }
 0x1d9   :  { %v590_v26 = vadd.f32 %v1522_v30, %v589_v25  ;;  %v1190_v27 = vpop.f32.mrb[18].mxu1 }
 0x1da   :  { %v601_v28 = vadd.f32 %v1190_v27, %v1522_v30  ;;  %v592_v29 = vpop.f32.mrb[19].mxu1  ;;  %v670_v32 = vmax.f32 %v598_v24, 0.0 }
 0x1db   :  { %v593_v31 = vadd.f32 %v1522_v30, %v592_v29  ;;  %v668_v34 = vmax.f32 %v590_v26, 0.0 }
 0x1dc   :  { %v671_v33 = vmax.f32 %v601_v28, 0.0 }
 0x1dd   :  { %v669_v35 = vmax.f32 %v593_v31, 0.0 }
 0x1de   :  { %v725_v36 = vpack.c.bf16 %v671_v33, %v670_v32 }
 0x1df   :  { %v724_v37 = vpack.c.bf16 %v669_v35, %v668_v34  ;;  %v1193_v38 = vpop.f32.mrb[20].mxu1 }
 0x1e0   :  { %v614_v39 = vadd.f32 %v1193_v38, %v1522_v30  ;;  %v605_v40 = vpop.f32.mrb[21].mxu1 }
 0x1e1   :  { %v606_v41 = vadd.f32 %v1522_v30, %v605_v40  ;;  %v1194_v42 = vpop.f32.mrb[22].mxu1  ;;  %1106 = vmatprep.subr.bf16.mxu0 %v724_v37 }
 0x1e2   :  { %v617_v45 = vadd.f32 %v1194_v42, %v1522_v30  ;;  %v608_v46 = vpop.f32.mrb[23].mxu1  ;;  %1107 = vmatpush3.bf16.msra.mxu0 %v1530_v44  ;;  %v674_v48 = vmax.f32 %v614_v39, 0.0 }
 0x1e3   :  { %v609_v47 = vadd.f32 %v1522_v30, %v608_v46  ;;  %1108 = vmatprep.subr.bf16.mxu0 %v725_v36  ;;  %v672_v50 = vmax.f32 %v606_v41, 0.0 }
 0x1e4   :  { %v675_v49 = vmax.f32 %v617_v45, 0.0 }
 0x1e5   :  { %v673_v51 = vmax.f32 %v609_v47, 0.0 }
 0x1e6   :  { %v727_v52 = vpack.c.bf16 %v675_v49, %v674_v48  ;;  %1109 = vmatpush3.bf16.msra.mxu0 %v1528_v43 }
 0x1e7   :  { %v726_v53 = vpack.c.bf16 %v673_v51, %v672_v50  ;;  %v1197_v54 = vpop.f32.mrb[24].mxu1 }
 0x1e8   :  { %v630_v55 = vadd.f32 %v1197_v54, %v1522_v30  ;;  %v621_v56 = vpop.f32.mrb[25].mxu1 }
 0x1e9   :  { %v622_v59 = vadd.f32 %v1522_v30, %v621_v56  ;;  %v1198_v60 = vpop.f32.mrb[26].mxu1  ;;  %1110 = vmatprep.subr.bf16.mxu0 %v726_v53 }
 0x1ea   :  { %v633_v44 = vadd.f32 %v1198_v60, %v1522_v30  ;;  %v624_v61 = vpop.f32.mrb[27].mxu1  ;;  %1111 = vmatpush3.bf16.msra.mxu0 %v1538_v58  ;;  %v678_v63 = vmax.f32 %v630_v55, 0.0 }
 0x1eb   :  { %v625_v62 = vadd.f32 %v1522_v30, %v624_v61  ;;  %1112 = vmatprep.subr.bf16.mxu0 %v727_v52  ;;  %v676_v43 = vmax.f32 %v622_v59, 0.0 }
 0x1ec   :  { %v679_v0 = vmax.f32 %v633_v44, 0.0 }
 0x1ed   :  { %v677_v1 = vmax.f32 %v625_v62, 0.0 }
 0x1ee   :  { %v729_v2 = vpack.c.bf16 %v679_v0, %v678_v63  ;;  %1113 = vmatpush3.bf16.msra.mxu0 %v1536_v57 }
 0x1ef   :  { %v728_v3 = vpack.c.bf16 %v677_v1, %v676_v43  ;;  %v1201_v4 = vpop.f32.mrb[28].mxu1 }
 0x1f0   :  { %v646_v5 = vadd.f32 %v1201_v4, %v1522_v30  ;;  %v637_v6 = vpop.f32.mrb[29].mxu1 }
 0x1f1   :  { %v638_v21 = vadd.f32 %v1522_v30, %v637_v6  ;;  %v1202_v9 = vpop.f32.mrb[30].mxu1  ;;  %1114 = vmatprep.subr.bf16.mxu0 %v728_v3 }
 0x1f2   :  { %v649_v58 = vadd.f32 %v1202_v9, %v1522_v30  ;;  %v640_v10 = vpop.f32.mrb[31].mxu1  ;;  %1115 = vmatpush3.bf16.msra.mxu0 %v1546_v8  ;;  %v682_v12 = vmax.f32 %v646_v5, 0.0  ;;  %v1286_v8 = vmov 0.0  }
 0x1f3   :  { %v641_v11 = vadd.f32 %v1522_v30, %v640_v10  ;;  %1116 = vmatprep.subr.bf16.mxu0 %v729_v2  ;;  %v680_v57 = vmax.f32 %v638_v21, 0.0  ;;  %1211 = vmatprep.mubr.msk.f32.mxu1 %vm1285_vm3, %v1286_v8 }
 0x1f4   :  { %v683_v13 = vmax.f32 %v649_v58, 0.0 }
 0x1f5   :  { %v681_v14 = vmax.f32 %v641_v11, 0.0 }
 0x1f6   :  { %v731_v15 = vpack.c.bf16 %v683_v13, %v682_v12  ;;  %1117 = vmatpush3.bf16.msra.mxu0 %v1544_v7  ;;  %v1069_v7 = vld [vmem:[%s1603_s7] ss:$0 sm:$0xff] }
 0x1f7   :  { %v730_v16 = vpack.c.bf16 %v681_v14, %v680_v57 }
 0x1f9   :  { %1118 = vmatprep.subr.bf16.mxu0 %v730_v16 }
 0x1fa   :  { %1119 = vmatpush3.bf16.msra.mxu0 %v1554_v22 }
 0x1fb   :  { %1120 = vmatprep.subr.bf16.mxu0 %v731_v15 }
 0x1fe   :  { %1121 = vmatpush3.bf16.msra.mxu0 %v1552_v20 }
 0x201   :  { %893 = vmatmul.mubr.bf16.vlgmr.msra.gmra.mrb[32].mxu0 %v836_v17 }
 0x2d4   :  { %v1122_v30 = vpop.f32.mrb[32].mxu0 }
 0x2d5   :  { %v1123_v18 = vpop.f32.mrb[33].mxu0 }
 0x2d6   :  { %v1124_v19 = vadd.f32 %v1123_v18, %v1122_v30  ;;  %v1125_v23 = vpop.f32.mrb[34].mxu0 }
 0x2d7   :  { %v1126_v24 = vpop.f32.mrb[35].mxu0 }
 0x2d8   :  { %1212 = vmatmul.mubr.msk.f32.vlgmr.msra.gmra.mrb[32].mxu1 %vm442_vm2, %v1124_v19 }
 0x3ab   :  { %v980_v22 = vpop.f32.mrb[32].mxu1 }
 0x3ac   :  { %v981_v20 = vadd.f32 %v1069_v7, %v980_v22  ;;  %v1213_v25 = vpop.f32.mrb[33].mxu1 }
 0x3ae   :  { %985 = vst.msk [vmem:[#allocation2] sm:$0x3] %vm984_vm4, %v981_v20 }
 0x3af   :  { %1271 = shalt.err (!%p1268_p4)
}
 0x3b0   :  { %s1272_s15 = scalar_lea.hbm %s1604_s8, 32 }
 0x3b1   :  { %p1273_p5 = scmp.ne.s32.totalorder %s1604_s8, %s1272_s15  ;;  %p1276_p6 = scmp.lt.u32.totalorder %s1272_s15, %s1604_s8 }
 0x3b3   :  { %p1278_p7 = pnand %p1276_p6, %p1273_p5 }
 0x3b5   :  { %1281 = shalt.err (!%p1278_p7)
}
 0x3b6   :  { %995 = dma.vmem_to_hbm [thread:$0]  %s993_s12, 32, %s1604_s8, [#allocation3]  }
 0x3b7   :  { %1282 = dma.done.wait [#allocation3], 32  }
 0x3b8   :  { %1283 = vsyncadd [#allocation3], 4294967264 }
 0x3b9   :  { %999 = vsyncpa [#allocation3], 1 }

</bundles_post_ra>
